<compile_context>
chip_gen: v7x
topology: tpu7x:2x2x1
jax: 0.10.0
libtpu: 0.0.40
codegen_flags: <defaults>
</compile_context>

<pallas_src>
import math

import jax
import jax.numpy as jnp
from jax.experimental import pallas as pl
from jax.experimental.pallas import tpu as pltpu

HIDDEN = 128


def _round_up(n, m):
    return ((n + m - 1) // m) * m


def _default_min_tiles():
    # v7x has 2 TensorCores per chip: the "parallel" batch axis only shards if
    # there are >= 2 tiles. v5e / v6e have one TC, so fewest tiles wins there.
    try:
        kind = jax.devices()[0].device_kind.lower()
        if "v7" in kind:
            return 2
    except Exception:
        pass
    return 1


def dqn_kernel(x_ref, w1_ref, b1_ref, w2_ref, b2_ref, w3_ref, b3_ref, o_ref):
    # x tile: (TB, in_size) f32. Weights/biases are whole-array with a constant
    # index_map, so they stay VMEM-resident and are DMA'd only once.
    # Cast x to the weight dtype *inside* the kernel (VPU work hidden under
    # MXU/DMA slots) so the wrapper never makes an extra HBM copy of x.
    x = x_ref[...].astype(w1_ref.dtype)

    # fc1 + relu: MXU matmul with f32 accumulation; bias/ReLU in f32 on VPU.
    h1 = jnp.dot(x, w1_ref[...], preferred_element_type=jnp.float32) + b1_ref[...]
    h1 = jnp.maximum(h1, 0.0)

    # fc2 + relu.
    h2 = jnp.dot(h1.astype(w2_ref.dtype), w2_ref[...],
                 preferred_element_type=jnp.float32) + b2_ref[...]
    h2 = jnp.maximum(h2, 0.0)

    # fc3 (no activation). Only the logical out_size columns are stored; the
    # masked (<128-lane) store cost is tiny vs. the saved HBM writeback.
    out = jnp.dot(h2.astype(w3_ref.dtype), w3_ref[...],
                  preferred_element_type=jnp.float32) + b3_ref[...]
    o_ref[...] = out.astype(o_ref.dtype)


def prepare_params(params, weights_dtype=jnp.bfloat16):
    """One-time parameter prep (call once, NOT per forward step).

    Casts weights to `weights_dtype` (bf16 default -> native MXU dtype on
    v5e/v6e/v7x, halves the weight fetch). Biases stay f32 and 2-D so the
    in-kernel epilogue is pure f32.
    """
    return {
        "w1": params["w1"].astype(weights_dtype),
        "w2": params["w2"].astype(weights_dtype),
        "w3": params["w3"].astype(weights_dtype),
        "b1": params["b1"].reshape(1, -1).astype(jnp.float32),
        "b2": params["b2"].reshape(1, -1).astype(jnp.float32),
        "b3": params["b3"].reshape(1, -1).astype(jnp.float32),
    }


def _jax_forward(x, p):
    # Plain-XLA path for tiny batches (pallas_call launch overhead dominates).
    h1 = jnp.maximum(jnp.dot(x.astype(p["w1"].dtype), p["w1"],
                             preferred_element_type=jnp.float32) + p["b1"], 0.0)
    h2 = jnp.maximum(jnp.dot(h1.astype(p["w2"].dtype), p["w2"],
                             preferred_element_type=jnp.float32) + p["b2"], 0.0)
    return jnp.dot(h2.astype(p["w3"].dtype), p["w3"],
                   preferred_element_type=jnp.float32) + p["b3"]


def dqn_forward(x, prepared, *, block_b=2048, min_tiles=None,
                jax_fallback_batch=32):
    """Fused 3-layer MLP. x: (B, input_size) f32 -> (B, output_size) f32."""
    B, in_size = x.shape
    w1, b1 = prepared["w1"], prepared["b1"]
    w2, b2 = prepared["w2"], prepared["b2"]
    w3, b3 = prepared["w3"], prepared["b3"]
    hidden = w1.shape[1]
    out_size = w3.shape[1]

    if B <= jax_fallback_batch:
        return _jax_forward(x, prepared)

    # ---- Batch tiling -------------------------------------------------------
    # tb minimizes padding waste; on v7x force an even tile count for large
    # batches so both TensorCores get work. No jnp.pad / output slice: the last
    # (possibly only) block is partial -- padded rows read unspecified data but
    # rows are independent and out-of-bounds stores are masked.
    if min_tiles is None:
        min_tiles = _default_min_tiles()
    n_tiles = max(1, pl.cdiv(B, block_b))
    if min_tiles > 1 and B >= 256 * min_tiles:
        n_tiles = _round_up(n_tiles, min_tiles)
    tb = _round_up(pl.cdiv(B, n_tiles), 8)
    grid = (pl.cdiv(B, tb),)

    # Advisory cost hint so XLA schedules the custom call sensibly inside a
    # larger training/inference step.
    flops = 2 * B * (in_size * hidden + hidden * hidden + hidden * out_size)
    param_bytes = sum(int(a.size) * a.dtype.itemsize
                      for a in (w1, b1, w2, b2, w3, b3))
    bytes_accessed = int(x.size) * x.dtype.itemsize + param_bytes + B * out_size * 4
    cost = pl.CostEstimate(flops=flops, transcendentals=0,
                           bytes_accessed=bytes_accessed)

    x_spec = pl.BlockSpec((tb, in_size), lambda i: (i, 0))
    const = lambda shape: pl.BlockSpec(shape, lambda i: (0, 0))
    out_spec = pl.BlockSpec((tb, out_size), lambda i: (i, 0))

    return pl.pallas_call(
        dqn_kernel,
        out_shape=jax.ShapeDtypeStruct((B, out_size), jnp.float32),
        grid=grid,
        in_specs=[
            x_spec,
            const((in_size, hidden)), const((1, hidden)),
            const((hidden, hidden)), const((1, hidden)),
            const((hidden, out_size)), const((1, out_size)),
        ],
        out_specs=out_spec,
        compiler_params=pltpu.CompilerParams(
            dimension_semantics=("parallel",),   # megacore sharding on v7x
        ),
        cost_estimate=cost,
    )(x, w1, b1, w2, b2, w3, b3)


def init_dqn_params(key, input_size, output_size, hidden=HIDDEN):
    """Deterministic init mimicking torch.nn.Linear default
    (uniform in [-1/sqrt(fan_in), 1/sqrt(fan_in)])."""
    keys = jax.random.split(key, 6)

    def linear(kw, kb, fan_in, fan_out):
        bound = 1.0 / math.sqrt(fan_in)
        w = jax.random.uniform(kw, (fan_in, fan_out), jnp.float32, -bound, bound)
        b = jax.random.uniform(kb, (1, fan_out), jnp.float32, -bound, bound)
        return w, b

    w1, b1 = linear(keys[0], keys[1], input_size, hidden)
    w2, b2 = linear(keys[2], keys[3], hidden, hidden)
    w3, b3 = linear(keys[4], keys[5], hidden, output_size)
    return {"w1": w1, "b1": b1, "w2": w2, "b2": b2, "w3": w3, "b3": b3}


def dqn_reference(x, params):
    """Pure-JAX f32 reference for correctness check."""
    h1 = jnp.maximum(x @ params["w1"] + params["b1"], 0.0)
    h2 = jnp.maximum(h1 @ params["w2"] + params["b2"], 0.0)
    return h2 @ params["w3"] + params["b3"]


if __name__ == "__main__":
    key = jax.random.PRNGKey(0)
    k_params, k_x1, k_x2, k_x3 = jax.random.split(key, 4)

    input_size = 16   # flattened grid-state for the coverage-path agent
    output_size = 8   # number of actions
    params = init_dqn_params(k_params, input_size, output_size)
    prepared_f32 = prepare_params(params, weights_dtype=jnp.float32)
    prepared_bf16 = prepare_params(params)  # default: bf16 weights

    # --- tiny inference batch: force the Pallas path (partial single block) --
    x_small = jax.random.normal(k_x1, (2, input_size), dtype=jnp.float32)
    ref_small = dqn_reference(x_small, params)
    out_small = jax.block_until_ready(
        dqn_forward(x_small, prepared_f32, jax_fallback_batch=0))
    assert out_small.shape == (2, output_size)
    assert jnp.allclose(out_small, ref_small, atol=1e-4, rtol=1e-4), \
        "f32 small-batch (kernel) mismatch vs reference"

    # --- tiny batch via the XLA fallback (default threshold) -----------------
    out_fb = jax.block_until_ready(dqn_forward(x_small, prepared_f32))
    assert jnp.allclose(out_fb, ref_small, atol=1e-4, rtol=1e-4), \
        "f32 small-batch (fallback) mismatch vs reference"

    # --- replay-style batch, default tiling (single near-exact tile) ---------
    x_big = jax.random.normal(k_x2, (300, input_size), dtype=jnp.float32)
    ref_big = dqn_reference(x_big, params)
    out_big = jax.block_until_ready(dqn_forward(x_big, prepared_f32))
    assert out_big.shape == (300, output_size)
    assert jnp.allclose(out_big, ref_big, atol=1e-4, rtol=1e-4), \
        "f32 single-tile mismatch vs reference"

    # --- same batch forced through multiple grid tiles (partial last block) --
    out_tiled = jax.block_until_ready(
        dqn_forward(x_big, prepared_f32, block_b=128))
    assert jnp.allclose(out_tiled, ref_big, atol=1e-4, rtol=1e-4), \
        "f32 multi-tile mismatch vs reference"

    # --- large training batch: 2-way tiling (exercises v7x dual-TC path) -----
    x_train = jax.random.normal(k_x3, (1024, input_size), dtype=jnp.float32)
    out_train = jax.block_until_ready(
        dqn_forward(x_train, prepared_f32, min_tiles=2))
    assert jnp.allclose(out_train, dqn_reference(x_train, params),
                        atol=1e-4, rtol=1e-4), \
        "f32 2-tile mismatch vs reference"

    # --- bf16-weight path (native MXU dtype), f32 accumulation ---------------
    out_bf16 = jax.block_until_ready(dqn_forward(x_big, prepared_bf16))
    assert out_bf16.shape == (300, output_size)
    assert jnp.allclose(out_bf16, ref_big, atol=5e-2, rtol=5e-2), \
        "bf16-weight mismatch vs reference"

    print("KERNEL_OK")
</pallas_src>

<mosaic_0001>
module attributes {stable_mosaic.version = 11 : i64} {
  func.func @dqn_kernel(%arg0: i32, %arg1: memref<8x16xf32, #tpu.memory_space<vmem>>, %arg2: memref<16x128xf32, #tpu.memory_space<vmem>>, %arg3: memref<1x128xf32, #tpu.memory_space<vmem>>, %arg4: memref<128x128xf32, #tpu.memory_space<vmem>>, %arg5: memref<1x128xf32, #tpu.memory_space<vmem>>, %arg6: memref<128x8xf32, #tpu.memory_space<vmem>>, %arg7: memref<1x8xf32, #tpu.memory_space<vmem>>, %arg8: memref<8x8xf32, #tpu.memory_space<vmem>>) attributes {dimension_semantics = [#tpu.dimension_semantics<parallel>], iteration_bounds = array<i64: 1>, scalar_prefetch = 0 : i64, scratch_operands = 0 : i64, tpu.core_type = #tpu.core_type<tc>, window_params = [{transform_indices = @transform_0, window_bounds = array<i64: 8, 16>}, {pipeline_mode = #tpu.pipeline_mode<synchronous>, transform_indices = @transform_1, window_bounds = array<i64: 16, 128>}, {pipeline_mode = #tpu.pipeline_mode<synchronous>, transform_indices = @transform_2, window_bounds = array<i64: 1, 128>}, {pipeline_mode = #tpu.pipeline_mode<synchronous>, transform_indices = @transform_3, window_bounds = array<i64: 128, 128>}, {pipeline_mode = #tpu.pipeline_mode<synchronous>, transform_indices = @transform_4, window_bounds = array<i64: 1, 128>}, {pipeline_mode = #tpu.pipeline_mode<synchronous>, transform_indices = @transform_5, window_bounds = array<i64: 128, 8>}, {pipeline_mode = #tpu.pipeline_mode<synchronous>, transform_indices = @transform_6, window_bounds = array<i64: 1, 8>}, {transform_indices = @transform_7, window_bounds = array<i64: 8, 8>}]} {
    %c0 = arith.constant 0 : index
    %c0_0 = arith.constant 0 : index
    %0 = vector.load %arg1[%c0, %c0_0] : memref<8x16xf32, #tpu.memory_space<vmem>>, vector<8x16xf32>
    %c0_1 = arith.constant 0 : index
    %c0_2 = arith.constant 0 : index
    %1 = vector.load %arg2[%c0_1, %c0_2] : memref<16x128xf32, #tpu.memory_space<vmem>>, vector<16x128xf32>
    %cst = arith.constant dense<0.000000e+00> : vector<8x128xf32>
    %2 = tpu.matmul %0, %1, %cst {dimension_numbers = #tpu.dot_dimension_numbers<[1], [0], [0], [1], [0, 0, 1, 1], [], []>} : vector<8x16xf32>, vector<16x128xf32>, vector<8x128xf32> -> vector<8x128xf32>
    %c0_3 = arith.constant 0 : index
    %c0_4 = arith.constant 0 : index
    %3 = vector.load %arg3[%c0_3, %c0_4] : memref<1x128xf32, #tpu.memory_space<vmem>>, vector<1x128xf32>
    %4 = vector.broadcast %3 : vector<1x128xf32> to vector<8x128xf32>
    %5 = arith.addf %2, %4 : vector<8x128xf32>
    %cst_5 = arith.constant 0.000000e+00 : f32
    %6 = vector.broadcast %cst_5 : f32 to vector<8x128xf32>
    %7 = arith.maximumf %5, %6 : vector<8x128xf32>
    %c0_6 = arith.constant 0 : index
    %c0_7 = arith.constant 0 : index
    %8 = vector.load %arg4[%c0_6, %c0_7] : memref<128x128xf32, #tpu.memory_space<vmem>>, vector<128x128xf32>
    %cst_8 = arith.constant dense<0.000000e+00> : vector<8x128xf32>
    %9 = tpu.matmul %7, %8, %cst_8 {dimension_numbers = #tpu.dot_dimension_numbers<[1], [0], [0], [1], [0, 0, 1, 1], [], []>} : vector<8x128xf32>, vector<128x128xf32>, vector<8x128xf32> -> vector<8x128xf32>
    %c0_9 = arith.constant 0 : index
    %c0_10 = arith.constant 0 : index
    %10 = vector.load %arg5[%c0_9, %c0_10] : memref<1x128xf32, #tpu.memory_space<vmem>>, vector<1x128xf32>
    %11 = vector.broadcast %10 : vector<1x128xf32> to vector<8x128xf32>
    %12 = arith.addf %9, %11 : vector<8x128xf32>
    %cst_11 = arith.constant 0.000000e+00 : f32
    %13 = vector.broadcast %cst_11 : f32 to vector<8x128xf32>
    %14 = arith.maximumf %12, %13 : vector<8x128xf32>
    %c0_12 = arith.constant 0 : index
    %c0_13 = arith.constant 0 : index
    %15 = vector.load %arg6[%c0_12, %c0_13] : memref<128x8xf32, #tpu.memory_space<vmem>>, vector<128x8xf32>
    %cst_14 = arith.constant dense<0.000000e+00> : vector<8x8xf32>
    %16 = tpu.matmul %14, %15, %cst_14 {dimension_numbers = #tpu.dot_dimension_numbers<[1], [0], [0], [1], [0, 0, 1, 1], [], []>} : vector<8x128xf32>, vector<128x8xf32>, vector<8x8xf32> -> vector<8x8xf32>
    %c0_15 = arith.constant 0 : index
    %c0_16 = arith.constant 0 : index
    %17 = vector.load %arg7[%c0_15, %c0_16] : memref<1x8xf32, #tpu.memory_space<vmem>>, vector<1x8xf32>
    %18 = vector.broadcast %17 : vector<1x8xf32> to vector<8x8xf32>
    %19 = arith.addf %16, %18 : vector<8x8xf32>
    %c0_17 = arith.constant 0 : index
    %c0_18 = arith.constant 0 : index
    %20 = vector.load %arg8[%c0_17, %c0_18] : memref<8x8xf32, #tpu.memory_space<vmem>>, vector<8x8xf32>
    tpu.vector_store %arg8[%c0_17, %c0_18], %19 {strides = array<i32>} : memref<8x8xf32, #tpu.memory_space<vmem>>, vector<8x8xf32>,
    return
  }
  func.func @transform_0(%arg0: i32) -> (i32, i32) {
    %c0_i32 = arith.constant 0 : i32
    %c0_i32_0 = arith.constant 0 : i32
    return %arg0, %c0_i32 : i32, i32
  }
  func.func @transform_1(%arg0: i32) -> (i32, i32) {
    %c0_i32 = arith.constant 0 : i32
    %c0_i32_0 = arith.constant 0 : i32
    %c0_i32_1 = arith.constant 0 : i32
    return %c0_i32, %c0_i32_0 : i32, i32
  }
  func.func @transform_2(%arg0: i32) -> (i32, i32) {
    %c0_i32 = arith.constant 0 : i32
    %c0_i32_0 = arith.constant 0 : i32
    %c0_i32_1 = arith.constant 0 : i32
    return %c0_i32, %c0_i32_0 : i32, i32
  }
  func.func @transform_3(%arg0: i32) -> (i32, i32) {
    %c0_i32 = arith.constant 0 : i32
    %c0_i32_0 = arith.constant 0 : i32
    %c0_i32_1 = arith.constant 0 : i32
    return %c0_i32, %c0_i32_0 : i32, i32
  }
  func.func @transform_4(%arg0: i32) -> (i32, i32) {
    %c0_i32 = arith.constant 0 : i32
    %c0_i32_0 = arith.constant 0 : i32
    %c0_i32_1 = arith.constant 0 : i32
    return %c0_i32, %c0_i32_0 : i32, i32
  }
  func.func @transform_5(%arg0: i32) -> (i32, i32) {
    %c0_i32 = arith.constant 0 : i32
    %c0_i32_0 = arith.constant 0 : i32
    %c0_i32_1 = arith.constant 0 : i32
    return %c0_i32, %c0_i32_0 : i32, i32
  }
  func.func @transform_6(%arg0: i32) -> (i32, i32) {
    %c0_i32 = arith.constant 0 : i32
    %c0_i32_0 = arith.constant 0 : i32
    %c0_i32_1 = arith.constant 0 : i32
    return %c0_i32, %c0_i32_0 : i32, i32
  }
  func.func @transform_7(%arg0: i32) -> (i32, i32) {
    %c0_i32 = arith.constant 0 : i32
    %c0_i32_0 = arith.constant 0 : i32
    return %arg0, %c0_i32 : i32, i32
  }
}

</mosaic_0001>

<bundles_post_ra>
// kernel: tpu_custom_call.1
= control target key start
LH: loop header
LB: loop body
LE: loop exit
PB: predicated region body
PF: predicated region fallthrough
CT: control target
= control target key end

     0   :  { %12 = vsyncpa [#allocation3], 0  ;;  %s804_s0 = inlined_call_operand.vmem [shape: f32[2,16], index: 0, kind: input, shape index: {}]   ;;  %s805_s1 = inlined_call_operand.vmem [shape: f32[16,128], index: 1, kind: input, shape index: {}]   ;;  %s806_s2 = inlined_call_operand.hbm [shape: f32[1,128], index: 2, kind: input, shape index: {}]   ;;  %s807_s3 = inlined_call_operand.vmem [shape: f32[128,128], index: 3, kind: input, shape index: {}]   ;;  %s808_s4 = inlined_call_operand.hbm [shape: f32[1,128], index: 4, kind: input, shape index: {}]   ;;  %s809_s5 = inlined_call_operand.vmem [shape: f32[128,8], index: 5, kind: input, shape index: {}]   ;;  %s810_s6 = inlined_call_operand.vmem [shape: f32[1,8], index: 6, kind: input, shape index: {}]   ;;  %s811_s7 = inlined_call_operand.hbm [shape: f32[2,8], index: 7, kind: output, shape index: {}]  }
   0x1   :  { %13 = vsyncpa [#allocation6], 0 }
   0x2   :  { %14 = vsyncpa [#allocation4], 0  ;;  %s592_s24 = smov [#allocation2]   ;;  %s593_s26 = smov [#allocation5]  }
   0x3   :  { %s25_s25 = sshll.u32 %s592_s24, 4  ;;  %s37_s27 = sshll.u32 %s593_s26, 4  ;;  %s26_s25 = int_to_ptr.vmem [resolvable:$true] %s25_s25  ;;  %s38_s27 = int_to_ptr.vmem [resolvable:$true] %s37_s27 }
   0x4   :  { %s520_s30 = scalar_lea.hbm %s806_s2, 16 }
   0x5   :  { %p521_p0 = scmp.ne.s32.totalorder %s806_s2, %s520_s30  ;;  %p524_p1 = scmp.lt.u32.totalorder %s520_s30, %s806_s2 }
   0x7   :  { %p526_p2 = pnand %p524_p1, %p521_p0 }
   0x9   :  { %529 = shalt.err (!%p526_p2)
}
   0xa   :  { %s530_s12 = scalar_lea.vmem %s26_s25, 16  ;;  %s534_s13 = scalar_lea.vmem %s26_s25, 32 }
   0xb   :  { %p531_p3 = scmp.ne.s32.totalorder %s26_s25, %s530_s12  ;;  %p535_p4 = scmp.lt.s32.totalorder %s26_s25, %s26_s25 }
   0xc   :  { %p536_p5 = scmp.lt.s32.totalorder %s534_s13, %s530_s12 }
   0xe   :  { %p537_p6 = por %p536_p5, %p535_p4 }
  0x10   :  { %p538_p7 = pnand %p537_p6, %p531_p3 }
  0x12   :  { %541 = shalt.err (!%p538_p7)
}
  0x13   :  { %28 = dma.hbm_to_vmem [thread:$0]  %s806_s2, 16, %s26_s25, [#allocation3]  }
  0x14   :  { %s542_s18 = scalar_lea.hbm %s808_s4, 16 }
  0x15   :  { %p543_p8 = scmp.ne.s32.totalorder %s808_s4, %s542_s18  ;;  %p546_p9 = scmp.lt.u32.totalorder %s542_s18, %s808_s4 }
  0x17   :  { %p548_p10 = pnand %p546_p9, %p543_p8 }
  0x19   :  { %551 = shalt.err (!%p548_p10)
}
  0x1a   :  { %s552_s23 = scalar_lea.vmem %s38_s27, 16  ;;  %s556_s24 = scalar_lea.vmem %s38_s27, 32 }
  0x1b   :  { %p553_p11 = scmp.ne.s32.totalorder %s38_s27, %s552_s23  ;;  %p557_p12 = scmp.lt.s32.totalorder %s38_s27, %s38_s27 }
  0x1c   :  { %p558_p13 = scmp.lt.s32.totalorder %s556_s24, %s552_s23 }
  0x1e   :  { %p559_p0 = por %p558_p13, %p557_p12 }
  0x20   :  { %p560_p1 = pnand %p559_p0, %p553_p11 }
  0x22   :  { %563 = shalt.err (!%p560_p1)
}
  0x23   :  { %40 = dma.hbm_to_vmem [thread:$0]  %s808_s4, 16, %s38_s27, [#allocation6]  }
  0x24   :  { %586 = dma.done.wait [#allocation3], 16  }
  0x25   :  { %587 = vsyncadd [#allocation3], 4294967280 }
  0x26   :  { %588 = dma.done.wait [#allocation6], 16  }
  0x27   :  { %589 = vsyncadd [#allocation6], 4294967280  ;;  %v594_v0 = vmov 0.0|0.0   ;;  %vm595_vm0 = vmmov 0   ;;  %v596_v1 = vmov 0.0   ;;  %v52_v2 = vld [vmem:[%s805_s1] sm:$0xff] }
  0x28   :  { %461 = vmatprep.subr.bf16.mxu0 %v594_v0  ;;  %388 = vmatprep.mubr.msk.f32.mxu0 %vm595_vm0, %v596_v1  ;;  %v53_v3 = vld [vmem:[%s805_s1 + $0x8] sm:$0xff]  ;;  %v136_v5 = vld [vmem:[%s807_s3] sm:$0xff]  ;;  %v138_v7 = vld [vmem:[%s807_s3 + $0x10] sm:$0xff]  ;;  %vm61_vm1 = vcmask 130048   ;;  %vm323_vm2 = vcmask 64512  }
  0x29   :  { %464 = vmatprep.subr.bf16.mxu1 %v594_v0  ;;  %423 = vmatprep.mubr.msk.f32.mxu1 %vm595_vm0, %v596_v1  ;;  %v462_v4 = vpack.c.bf16 %v53_v3, %v52_v2  ;;  %v137_v6 = vld [vmem:[%s807_s3 + $0x8] sm:$0xff]  ;;  %v139_v9 = vld [vmem:[%s807_s3 + $0x18] sm:$0xff]  ;;  %v51_v10 = vld [vmem:[%s804_s0] sm:$0xff] }
  0x2a   :  { %v465_v8 = vpack.c.bf16 %v137_v6, %v136_v5  ;;  %v468_v11 = vpack.c.bf16 %v139_v9, %v138_v7  ;;  %v140_v12 = vld [vmem:[%s807_s3 + $0x20] sm:$0xff]  ;;  %v141_v13 = vld [vmem:[%s807_s3 + $0x28] sm:$0xff]  ;;  %v142_v15 = vld [vmem:[%s807_s3 + $0x30] sm:$0xff] }
  0x2b   :  { %463 = vmatpush3.bf16.msra.mxu0 %v462_v4  ;;  %v471_v14 = vpack.c.bf16 %v141_v13, %v140_v12  ;;  %v143_v16 = vld [vmem:[%s807_s3 + $0x38] sm:$0xff]  ;;  %v144_v18 = vld [vmem:[%s807_s3 + $0x40] sm:$0xff]  ;;  %v145_v19 = vld [vmem:[%s807_s3 + $0x48] sm:$0xff] }
  0x2c   :  { %466 = vmatpush3.bf16.msra.mxu1 %v465_v8  ;;  %488 = vmatprep.subr.bf16.mxu0 %v594_v0  ;;  %v474_v17 = vpack.c.bf16 %v143_v16, %v142_v15  ;;  %v477_v20 = vpack.c.bf16 %v145_v19, %v144_v18  ;;  %v146_v21 = vld [vmem:[%s807_s3 + $0x50] sm:$0xff]  ;;  %v147_v22 = vld [vmem:[%s807_s3 + $0x58] sm:$0xff]  ;;  %v148_v24 = vld [vmem:[%s807_s3 + $0x60] sm:$0xff] }
  0x2d   :  { %467 = vmatprep.subr.bf16.mxu1 %v594_v0  ;;  %v480_v23 = vpack.c.bf16 %v147_v22, %v146_v21  ;;  %v149_v25 = vld [vmem:[%s807_s3 + $0x68] sm:$0xff]  ;;  %v150_v27 = vld [vmem:[%s807_s3 + $0x70] sm:$0xff]  ;;  %v151_v28 = vld [vmem:[%s807_s3 + $0x78] sm:$0xff] }
  0x2e   :  { %389 = vmatmul.mubr.msk.f32.vlgmr.msra.gmra.mrb[0].mxu0 %vm61_vm1, %v51_v10  ;;  %v483_v26 = vpack.c.bf16 %v149_v25, %v148_v24  ;;  %v486_v29 = vpack.c.bf16 %v151_v28, %v150_v27  ;;  %v230_v30 = vld [vmem:[%s809_s5] sm:$0xff]  ;;  %v231_v31 = vld [vmem:[%s809_s5 + $0x8] sm:$0xff]  ;;  %v232_v32 = vld [vmem:[%s809_s5 + $0x10] sm:$0xff] }
  0x2f   :  { %458 = vmatprep.mubr.msk.f32.mxu0 %vm595_vm0, %v596_v1  ;;  %v489_v33 = vpack.c.bf16 %v231_v31, %v230_v30  ;;  %v233_v34 = vld [vmem:[%s809_s5 + $0x18] sm:$0xff]  ;;  %v234_v36 = vld [vmem:[%s809_s5 + $0x20] sm:$0xff]  ;;  %v235_v37 = vld [vmem:[%s809_s5 + $0x28] sm:$0xff] }
  0x30   :  { %469 = vmatpush3.bf16.msra.mxu1 %v468_v11  ;;  %v492_v35 = vpack.c.bf16 %v233_v34, %v232_v32  ;;  %v495_v38 = vpack.c.bf16 %v235_v37, %v234_v36  ;;  %v236_v39 = vld [vmem:[%s809_s5 + $0x30] sm:$0xff]  ;;  %v237_v40 = vld [vmem:[%s809_s5 + $0x38] sm:$0xff]  ;;  %v238_v42 = vld [vmem:[%s809_s5 + $0x40] sm:$0xff] }
  0x31   :  { %470 = vmatprep.subr.bf16.mxu1 %v594_v0  ;;  %490 = vmatpush3.bf16.msra.mxu0 %v489_v33  ;;  %v498_v41 = vpack.c.bf16 %v237_v40, %v236_v39  ;;  %v239_v43 = vld [vmem:[%s809_s5 + $0x48] sm:$0xff]  ;;  %v240_v45 = vld [vmem:[%s809_s5 + $0x50] sm:$0xff]  ;;  %v241_v46 = vld [vmem:[%s809_s5 + $0x58] sm:$0xff] }
  0x32   :  { %491 = vmatprep.subr.bf16.mxu0 %v594_v0  ;;  %v501_v44 = vpack.c.bf16 %v239_v43, %v238_v42  ;;  %v504_v47 = vpack.c.bf16 %v241_v46, %v240_v45  ;;  %v242_v48 = vld [vmem:[%s809_s5 + $0x60] sm:$0xff]  ;;  %v243_v49 = vld [vmem:[%s809_s5 + $0x68] sm:$0xff]  ;;  %v244_v56 = vld [vmem:[%s809_s5 + $0x70] sm:$0xff] }
  0x33   :  { %v507_v50 = vpack.c.bf16 %v243_v49, %v242_v48  ;;  %v343_v51 = vld [vmem:[#allocation2] ss:$0 sm:$0xff]  ;;  %v245_v57 = vld [vmem:[%s809_s5 + $0x78] sm:$0xff]  ;;  %v345_v59 = vld [vmem:[#allocation5] ss:$0 sm:$0xff] }
  0x34   :  { %472 = vmatpush3.bf16.msra.mxu1 %v471_v14  ;;  %v510_v58 = vpack.c.bf16 %v245_v57, %v244_v56 }
  0x35   :  { %473 = vmatprep.subr.bf16.mxu1 %v594_v0  ;;  %493 = vmatpush3.bf16.msra.mxu0 %v492_v35 }
  0x36   :  { %494 = vmatprep.subr.bf16.mxu0 %v594_v0 }
  0x38   :  { %475 = vmatpush3.bf16.msra.mxu1 %v474_v17 }
  0x39   :  { %476 = vmatprep.subr.bf16.mxu1 %v594_v0  ;;  %496 = vmatpush3.bf16.msra.mxu0 %v495_v38 }
  0x3a   :  { %497 = vmatprep.subr.bf16.mxu0 %v594_v0 }
  0x3c   :  { %478 = vmatpush3.bf16.msra.mxu1 %v477_v20 }
  0x3d   :  { %479 = vmatprep.subr.bf16.mxu1 %v594_v0  ;;  %499 = vmatpush3.bf16.msra.mxu0 %v498_v41 }
  0x3e   :  { %500 = vmatprep.subr.bf16.mxu0 %v594_v0 }
  0x40   :  { %481 = vmatpush3.bf16.msra.mxu1 %v480_v23 }
  0x41   :  { %482 = vmatprep.subr.bf16.mxu1 %v594_v0  ;;  %502 = vmatpush3.bf16.msra.mxu0 %v501_v44 }
  0x42   :  { %503 = vmatprep.subr.bf16.mxu0 %v594_v0 }
  0x44   :  { %484 = vmatpush3.bf16.msra.mxu1 %v483_v26 }
  0x45   :  { %485 = vmatprep.subr.bf16.mxu1 %v594_v0  ;;  %505 = vmatpush3.bf16.msra.mxu0 %v504_v47 }
  0x46   :  { %506 = vmatprep.subr.bf16.mxu0 %v594_v0 }
  0x48   :  { %487 = vmatpush3.bf16.msra.mxu1 %v486_v29 }
  0x49   :  { %508 = vmatpush3.bf16.msra.mxu0 %v507_v50 }
  0x4a   :  { %509 = vmatprep.subr.bf16.mxu0 %v594_v0  ;;  %v346_v0 = vld [vmem:[%s810_s6] ss:$0 sm:$0xff] }
  0x4d   :  { %511 = vmatpush3.bf16.msra.mxu0 %v510_v58 }
 0x101   :  { %v131_v52 = vpop.f32.mrb[0].mxu0 }
 0x102   :  { %v132_v53 = vadd.f32 %v343_v51, %v131_v52  ;;  %v390_v54 = vpop.f32.mrb[1].mxu0 }
 0x104   :  { %v135_v55 = vmax.f32 %v132_v53, 0.0 }
 0x106   :  { %424 = vmatmul.mubr.f32.vlgmr.msra.gmra.mrb[0].mxu1 %v135_v55 }
 0x1d9   :  { %v225_v60 = vpop.f32.mrb[0].mxu1 }
 0x1da   :  { %v226_v61 = vadd.f32 %v345_v59, %v225_v60  ;;  %v425_v62 = vpop.f32.mrb[1].mxu1 }
 0x1dc   :  { %v229_v63 = vmax.f32 %v226_v61, 0.0 }
 0x1de   :  { %459 = vmatmul.mubr.f32.vlgmr.msra.gmra.mrb[2].mxu0 %v229_v63 }
 0x2b1   :  { %v319_v1 = vpop.f32.mrb[2].mxu0 }
 0x2b2   :  { %v320_v2 = vadd.f32 %v346_v0, %v319_v1  ;;  %v460_v3 = vpop.f32.mrb[3].mxu0 }
 0x2b4   :  { %324 = vst.msk [vmem:[#allocation7] sm:$0xff] %vm323_vm2, %v320_v2 }
 0x2b5   :  { %329 = vsyncadd [#allocation4], 96  ;;  %s597_s18 = smov [#allocation7]  }
 0x2b6   :  { %s330_s5 = sshll.u32 %s597_s18, 4  ;;  %s331_s5 = int_to_ptr.vmem [resolvable:$true] %s330_s5 }
 0x2b7   :  { %s564_s0 = scalar_lea.vmem %s331_s5, 32  ;;  %s568_s3 = scalar_lea.vmem %s331_s5, 128 }
 0x2b8   :  { %p565_p2 = scmp.ne.s32.totalorder %s331_s5, %s564_s0  ;;  %p569_p3 = scmp.lt.s32.totalorder %s331_s5, %s331_s5 }
 0x2b9   :  { %p570_p4 = scmp.lt.s32.totalorder %s568_s3, %s564_s0 }
 0x2bb   :  { %p571_p5 = por %p570_p4, %p569_p3 }
 0x2bd   :  { %p572_p6 = pnand %p571_p5, %p565_p2 }
 0x2bf   :  { %575 = shalt.err (!%p572_p6)
}
 0x2c0   :  { %s576_s6 = scalar_lea.hbm %s811_s7, 32 }
 0x2c1   :  { %p577_p7 = scmp.ne.s32.totalorder %s811_s7, %s576_s6  ;;  %p580_p8 = scmp.lt.u32.totalorder %s576_s6, %s811_s7 }
 0x2c3   :  { %p582_p9 = pnand %p580_p8, %p577_p7 }
 0x2c5   :  { %585 = shalt.err (!%p582_p9)
}
 0x2c6   :  { %s598_s2 = smov 32   ;;  %s599_s25 = smov 2  }
 0x2c7   :  { %336 = dma.vmem_to_hbm [thread:$0]  %s331_s5, 32, %s811_s7, [#allocation4], %s598_s2, %s598_s2, %s599_s25  }
 0x2c8   :  { %590 = dma.done.wait [#allocation4], 128  }
 0x2c9   :  { %591 = vsyncadd [#allocation4], 4294967168 }
 0x2ca   :  { %340 = vsyncpa [#allocation3], 1 }
 0x2cb   :  { %341 = vsyncpa [#allocation6], 1 }
 0x2cc   :  { %342 = vsyncpa [#allocation4], 1 }

</bundles_post_ra>
